<compile_context>
chip_gen: v7x
topology: tpu7x:2x2x1
jax: 0.10.0
libtpu: 0.0.40
codegen_flags: <defaults>
</compile_context>

<pallas_src>
import functools
import math

import jax
import jax.numpy as jnp
import numpy as np
from jax.experimental import pallas as pl
from jax.experimental.pallas import tpu as pltpu


def down_kernel(x_ref, w_all_ref, b_all_ref, wo_ref, bo_ref, out_ref, *,
                n_heads, head_dim, seq_len, tile_b, d_model):
    """One grid step: `tile_b` batch elements folded into the matmul M dimension."""
    f32 = jnp.float32
    x = x_ref[...]                                   # (R, C), R = tile_b * L
    rows = tile_b * seq_len
    D = d_model
    E = head_dim

    # Single fused MXU matmul: [m | Q | K | V] = x @ W_all + b_all   (N = 4D)
    fused = jnp.dot(x, w_all_ref[...], preferred_element_type=f32) + b_all_ref[...]

    pooled = fused[:, :D]                            # AvgPool1d(4) output (m), (R, D)

    # 1/sqrt(E) is already folded into the Q columns of W_all / b_all.
    q_all = fused[:, D:2 * D].reshape(tile_b, seq_len, D)
    k_all = fused[:, 2 * D:3 * D].reshape(tile_b, seq_len, D)
    v_all = fused[:, 3 * D:4 * D].reshape(tile_b, seq_len, D)

    # Attention core per head (projections already fused above); static unroll.
    head_outs = []
    for h in range(n_heads):
        sl = slice(h * E, (h + 1) * E)
        qh = q_all[:, :, sl]                          # (tb, L, E)
        kh = k_all[:, :, sl]
        vh = v_all[:, :, sl]

        s = jnp.einsum('ble,bse->bls', qh, kh, preferred_element_type=f32)   # (tb, L, L)
        s = s - jnp.max(s, axis=-1, keepdims=True)
        p = jnp.exp(s)
        denom = jnp.sum(p, axis=-1, keepdims=True)
        r = pl.reciprocal(denom, approx=True)         # EUP slot
        r = r * (2.0 - denom * r)                     # one Newton step -> ~f32 accuracy
        a = p * r                                     # softmax
        head_outs.append(jnp.einsum('bls,bse->ble', a, vh,
                                    preferred_element_type=f32))             # (tb, L, E)

    # Heads contiguous in lanes (matches torch .view(B, L, H*E)); one output projection.
    o = jnp.concatenate(head_outs, axis=-1).reshape(rows, D)                 # (R, D)
    z = jnp.dot(o, wo_ref[...], preferred_element_type=f32) + bo_ref[...]    # (R, D)

    # Lane-dense combined output slab [z | m] -> (R, 2D); one DMA, split in wrapper.
    out_ref[...] = jnp.concatenate([z, pooled], axis=-1).astype(out_ref.dtype)


def make_pool_matrix(C):
    """(C, C//4) matrix implementing AvgPool1d(4) over consecutive channel groups."""
    D = C // 4
    p = np.zeros((C, D), dtype=np.float32)
    for c in range(C):
        p[c, c // 4] = 0.25
    return jnp.asarray(p)


def init_linear(key, fan_in, fan_out):
    """torch.nn.Linear-style uniform(-1/sqrt(fan_in), 1/sqrt(fan_in)) init."""
    kw, kb = jax.random.split(key)
    bound = 1.0 / math.sqrt(fan_in)
    w = jax.random.uniform(kw, (fan_in, fan_out), jnp.float32, -bound, bound)
    b = jax.random.uniform(kb, (1, fan_out), jnp.float32, -bound, bound)
    return w, b


def pack_params(pool_mat, wq, bq, wk, bk, wv, bv, wo, bo, n_heads):
    """Fold pooling + attention scale into one fused (C, 4D) projection weight."""
    C, D = pool_mat.shape
    E = D // n_heads
    scale = 1.0 / math.sqrt(E)
    w_all = jnp.concatenate([pool_mat,                       # -> m
                             pool_mat @ (wq * scale),        # -> Q (scale folded in)
                             pool_mat @ wk,                  # -> K
                             pool_mat @ wv], axis=1)         # -> V   (C, 4D)
    b_all = jnp.concatenate([jnp.zeros((1, D), jnp.float32),
                             bq * scale, bk, bv], axis=1)    # (1, 4D)
    return w_all, b_all, wo, bo


def choose_batch_tile(B, L, target_rows=4096, min_steps=2, min_rows_per_step=256):
    """Largest divisor of B whose tile holds <= ~target_rows rows; when the problem is
    big enough, prefer >= min_steps grid steps so v7x's two TCs both get work."""
    divisors = [tb for tb in range(1, B + 1) if B % tb == 0]
    fitting = [tb for tb in divisors if tb * L <= max(target_rows, L)]
    tb = max(fitting)
    if B // tb < min_steps:
        split = [t for t in fitting if B // t >= min_steps and t * L >= min_rows_per_step]
        if split:
            tb = max(split)
    return tb


def down_forward(x, params, n_heads=4):
    B, L, C = x.shape
    assert C % 4 == 0
    D = C // 4
    assert D % n_heads == 0
    E = D // n_heads
    wq, bq, wk, bk, wv, bv, wo, bo = params

    pool_mat = make_pool_matrix(C)
    w_all, b_all, wo_p, bo_p = pack_params(pool_mat, wq, bq, wk, bk, wv, bv, wo, bo,
                                           n_heads)

    tb = choose_batch_tile(B, L)              # demo (B=2, L=8) -> tb=2 -> one grid step
    grid = (B // tb,)
    rows = tb * L

    x_flat = x.reshape(B * L, C)              # batch folded into the matmul M dimension

    def rep(shape):                           # replicated (grid-invariant) operand
        n = len(shape)
        return pl.BlockSpec(shape, lambda i: (0,) * n)

    kernel = functools.partial(down_kernel, n_heads=n_heads, head_dim=E,
                               seq_len=L, tile_b=tb, d_model=D)

    # Advisory cost estimate so XLA schedules/overlaps the custom call sensibly.
    flops = (2 * B * L * C * 4 * D                 # fused [m|Q|K|V] projection
             + 2 * 2 * B * n_heads * L * L * E     # scores + A@V
             + 2 * B * L * D * D)                  # output projection
    transcendentals = B * n_heads * L * L + B * n_heads * L
    bytes_accessed = 4 * (B * L * C                # x
                          + C * 4 * D + 4 * D      # fused weights + bias
                          + D * D + D              # output projection
                          + B * L * 2 * D)         # combined [z|m] output

    out = pl.pallas_call(
        kernel,
        out_shape=jax.ShapeDtypeStruct((B * L, 2 * D), jnp.float32),
        grid=grid,
        in_specs=[
            pl.BlockSpec((rows, C), lambda i: (i, 0)),   # x, batch tile in rows
            rep((C, 4 * D)), rep((1, 4 * D)),            # fused W_all, b_all
            rep((D, D)), rep((1, D)),                    # Wo, bo
        ],
        out_specs=pl.BlockSpec((rows, 2 * D), lambda i: (i, 0)),
        compiler_params=pltpu.CompilerParams(
            dimension_semantics=("parallel",)),
        cost_estimate=pl.CostEstimate(flops=flops,
                                      transcendentals=transcendentals,
                                      bytes_accessed=bytes_accessed),
    )(x_flat, w_all, b_all, wo_p, bo_p)

    z = out[:, :D].reshape(B, L, D)
    m = out[:, D:].reshape(B, L, D)
    return z, m


def down_reference(x, params, n_heads=4):
    """Pure-JAX reference matching the PyTorch forward (eval mode)."""
    B, L, C = x.shape
    D = C // 4
    E = D // n_heads
    wq, bq, wk, bk, wv, bv, wo, bo = params

    pooled = x.reshape(B, L, D, 4).mean(-1)                    # AvgPool1d(4)
    q = (pooled @ wq + bq).reshape(B, L, n_heads, E)
    k = (pooled @ wk + bk).reshape(B, L, n_heads, E)
    v = (pooled @ wv + bv).reshape(B, L, n_heads, E)
    scores = jnp.einsum('blhe,bshe->bhls', q, k) / math.sqrt(E)
    a = jax.nn.softmax(scores, axis=-1)
    o = jnp.einsum('bhls,bshd->blhd', a, v).reshape(B, L, D)
    z = o @ wo + bo
    return z, pooled


if __name__ == "__main__":
    # Shapes consistent with the module: x (B, L, C), C % 4 == 0,
    # attention d_model = C // 4 = 16, n_heads = 4 -> head_dim = 4.
    B, L, C = 2, 8, 64
    H = 4
    D = C // 4

    key = jax.random.PRNGKey(0)
    kx, kq, kk, kv, ko = jax.random.split(key, 5)
    x = jax.random.normal(kx, (B, L, C), dtype=jnp.float32)

    wq, bq = init_linear(kq, D, D)
    wk, bk = init_linear(kk, D, D)
    wv, bv = init_linear(kv, D, D)
    wo, bo = init_linear(ko, D, D)
    params = (wq, bq, wk, bk, wv, bv, wo, bo)

    z, m = down_forward(x, params, n_heads=H)
    jax.block_until_ready((z, m))

    z_ref, m_ref = down_reference(x, params, n_heads=H)
    # m is pure matmul math (tight tolerance); z additionally uses the EUP
    # approximate reciprocal (+1 Newton step) in the softmax normalisation.
    assert np.allclose(np.asarray(m), np.asarray(m_ref), atol=1e-5, rtol=1e-5)
    assert np.allclose(np.asarray(z), np.asarray(z_ref), atol=1e-4, rtol=1e-4)
    print("KERNEL_OK")
</pallas_src>

<mosaic_0001>
module attributes {stable_mosaic.version = 11 : i64} {
  func.func @down_kernel(%arg0: i32, %arg1: memref<16x64xf32, #tpu.memory_space<vmem>>, %arg2: memref<64x64xf32, #tpu.memory_space<vmem>>, %arg3: memref<1x64xf32, #tpu.memory_space<vmem>>, %arg4: memref<16x16xf32, #tpu.memory_space<vmem>>, %arg5: memref<1x16xf32, #tpu.memory_space<vmem>>, %arg6: memref<16x32xf32, #tpu.memory_space<vmem>>) attributes {dimension_semantics = [#tpu.dimension_semantics<parallel>], iteration_bounds = array<i64: 1>, scalar_prefetch = 0 : i64, scratch_operands = 0 : i64, tpu.core_type = #tpu.core_type<tc>, window_params = [{transform_indices = @transform_0, window_bounds = array<i64: 16, 64>}, {pipeline_mode = #tpu.pipeline_mode<synchronous>, transform_indices = @transform_1, window_bounds = array<i64: 64, 64>}, {pipeline_mode = #tpu.pipeline_mode<synchronous>, transform_indices = @transform_2, window_bounds = array<i64: 1, 64>}, {pipeline_mode = #tpu.pipeline_mode<synchronous>, transform_indices = @transform_3, window_bounds = array<i64: 16, 16>}, {pipeline_mode = #tpu.pipeline_mode<synchronous>, transform_indices = @transform_4, window_bounds = array<i64: 1, 16>}, {transform_indices = @transform_5, window_bounds = array<i64: 16, 32>}]} {
    %c0 = arith.constant 0 : index
    %c0_0 = arith.constant 0 : index
    %0 = vector.load %arg1[%c0, %c0_0] : memref<16x64xf32, #tpu.memory_space<vmem>>, vector<16x64xf32>
    %c0_1 = arith.constant 0 : index
    %c0_2 = arith.constant 0 : index
    %1 = vector.load %arg2[%c0_1, %c0_2] : memref<64x64xf32, #tpu.memory_space<vmem>>, vector<64x64xf32>
    %cst = arith.constant dense<0.000000e+00> : vector<16x64xf32>
    %2 = tpu.matmul %0, %1, %cst {dimension_numbers = #tpu.dot_dimension_numbers<[1], [0], [0], [1], [0, 0, 1, 1], [], []>} : vector<16x64xf32>, vector<64x64xf32>, vector<16x64xf32> -> vector<16x64xf32>
    %c0_3 = arith.constant 0 : index
    %c0_4 = arith.constant 0 : index
    %3 = vector.load %arg3[%c0_3, %c0_4] : memref<1x64xf32, #tpu.memory_space<vmem>>, vector<1x64xf32>
    %4 = vector.broadcast %3 : vector<1x64xf32> to vector<16x64xf32>
    %5 = arith.addf %2, %4 : vector<16x64xf32>
    %6 = vector.extract_strided_slice %5 {offsets = [0, 0], sizes = [16, 16], strides = [1, 1]} : vector<16x64xf32> to vector<16x16xf32>
    %7 = vector.extract_strided_slice %5 {offsets = [0, 16], sizes = [16, 16], strides = [1, 1]} : vector<16x64xf32> to vector<16x16xf32>
    %8 = vector.shape_cast %7 : vector<16x16xf32> to vector<2x8x16xf32>
    %9 = vector.extract_strided_slice %5 {offsets = [0, 32], sizes = [16, 16], strides = [1, 1]} : vector<16x64xf32> to vector<16x16xf32>
    %10 = vector.shape_cast %9 : vector<16x16xf32> to vector<2x8x16xf32>
    %11 = vector.extract_strided_slice %5 {offsets = [0, 48], sizes = [16, 16], strides = [1, 1]} : vector<16x64xf32> to vector<16x16xf32>
    %12 = vector.shape_cast %11 : vector<16x16xf32> to vector<2x8x16xf32>
    %13 = vector.extract_strided_slice %8 {offsets = [0, 0, 0], sizes = [2, 8, 4], strides = [1, 1, 1]} : vector<2x8x16xf32> to vector<2x8x4xf32>
    %14 = vector.extract_strided_slice %10 {offsets = [0, 0, 0], sizes = [2, 8, 4], strides = [1, 1, 1]} : vector<2x8x16xf32> to vector<2x8x4xf32>
    %15 = vector.extract_strided_slice %12 {offsets = [0, 0, 0], sizes = [2, 8, 4], strides = [1, 1, 1]} : vector<2x8x16xf32> to vector<2x8x4xf32>
    "tpu.trace_start"() <{level = 10 : i32, message = "ble,bse->bls"}> : () -> ()
    %cst_5 = arith.constant dense<0.000000e+00> : vector<2x8x8xf32>
    %16 = tpu.matmul %13, %14, %cst_5 {dimension_numbers = #tpu.dot_dimension_numbers<[2], [2], [1], [1], [0, 0, 0, 1, 1, 1], [0], [0]>} : vector<2x8x4xf32>, vector<2x8x4xf32>, vector<2x8x8xf32> -> vector<2x8x8xf32>
    "tpu.trace_stop"() : () -> ()
    %cst_6 = arith.constant dense<0xFF800000> : vector<2x8xf32>
    %17 = vector.multi_reduction <maximumf>, %16, %cst_6 [2] : vector<2x8x8xf32> to vector<2x8xf32>
    %18 = vector.shape_cast %17 : vector<2x8xf32> to vector<2x8x1xf32>
    %19 = vector.broadcast %18 : vector<2x8x1xf32> to vector<2x8x8xf32>
    %20 = arith.subf %16, %19 : vector<2x8x8xf32>
    %21 = math.exp %20 : vector<2x8x8xf32>
    %cst_7 = arith.constant dense<0.000000e+00> : vector<2x8xf32>
    %22 = vector.multi_reduction <add>, %21, %cst_7 [2] : vector<2x8x8xf32> to vector<2x8xf32>
    %23 = vector.shape_cast %22 : vector<2x8xf32> to vector<2x8x1xf32>
    %24 = tpu.reciprocal %23 {approx = true} : vector<2x8x1xf32> -> vector<2x8x1xf32>
    %25 = arith.mulf %23, %24 : vector<2x8x1xf32>
    %cst_8 = arith.constant 2.000000e+00 : f32
    %26 = vector.broadcast %cst_8 : f32 to vector<2x8x1xf32>
    %27 = arith.subf %26, %25 : vector<2x8x1xf32>
    %28 = arith.mulf %24, %27 : vector<2x8x1xf32>
    %29 = vector.broadcast %28 : vector<2x8x1xf32> to vector<2x8x8xf32>
    %30 = arith.mulf %21, %29 : vector<2x8x8xf32>
    "tpu.trace_start"() <{level = 10 : i32, message = "bls,bse->ble"}> : () -> ()
    %cst_9 = arith.constant dense<0.000000e+00> : vector<2x8x4xf32>
    %31 = tpu.matmul %30, %15, %cst_9 {dimension_numbers = #tpu.dot_dimension_numbers<[2], [1], [1], [2], [0, 0, 0, 1, 1, 2], [0], [0]>} : vector<2x8x8xf32>, vector<2x8x4xf32>, vector<2x8x4xf32> -> vector<2x8x4xf32>
    "tpu.trace_stop"() : () -> ()
    %32 = vector.extract_strided_slice %8 {offsets = [0, 0, 4], sizes = [2, 8, 4], strides = [1, 1, 1]} : vector<2x8x16xf32> to vector<2x8x4xf32>
    %33 = vector.extract_strided_slice %10 {offsets = [0, 0, 4], sizes = [2, 8, 4], strides = [1, 1, 1]} : vector<2x8x16xf32> to vector<2x8x4xf32>
    %34 = vector.extract_strided_slice %12 {offsets = [0, 0, 4], sizes = [2, 8, 4], strides = [1, 1, 1]} : vector<2x8x16xf32> to vector<2x8x4xf32>
    "tpu.trace_start"() <{level = 10 : i32, message = "ble,bse->bls"}> : () -> ()
    %cst_10 = arith.constant dense<0.000000e+00> : vector<2x8x8xf32>
    %35 = tpu.matmul %32, %33, %cst_10 {dimension_numbers = #tpu.dot_dimension_numbers<[2], [2], [1], [1], [0, 0, 0, 1, 1, 1], [0], [0]>} : vector<2x8x4xf32>, vector<2x8x4xf32>, vector<2x8x8xf32> -> vector<2x8x8xf32>
    "tpu.trace_stop"() : () -> ()
    %cst_11 = arith.constant dense<0xFF800000> : vector<2x8xf32>
    %36 = vector.multi_reduction <maximumf>, %35, %cst_11 [2] : vector<2x8x8xf32> to vector<2x8xf32>
    %37 = vector.shape_cast %36 : vector<2x8xf32> to vector<2x8x1xf32>
    %38 = vector.broadcast %37 : vector<2x8x1xf32> to vector<2x8x8xf32>
    %39 = arith.subf %35, %38 : vector<2x8x8xf32>
    %40 = math.exp %39 : vector<2x8x8xf32>
    %cst_12 = arith.constant dense<0.000000e+00> : vector<2x8xf32>
    %41 = vector.multi_reduction <add>, %40, %cst_12 [2] : vector<2x8x8xf32> to vector<2x8xf32>
    %42 = vector.shape_cast %41 : vector<2x8xf32> to vector<2x8x1xf32>
    %43 = tpu.reciprocal %42 {approx = true} : vector<2x8x1xf32> -> vector<2x8x1xf32>
    %44 = arith.mulf %42, %43 : vector<2x8x1xf32>
    %cst_13 = arith.constant 2.000000e+00 : f32
    %45 = vector.broadcast %cst_13 : f32 to vector<2x8x1xf32>
    %46 = arith.subf %45, %44 : vector<2x8x1xf32>
    %47 = arith.mulf %43, %46 : vector<2x8x1xf32>
    %48 = vector.broadcast %47 : vector<2x8x1xf32> to vector<2x8x8xf32>
    %49 = arith.mulf %40, %48 : vector<2x8x8xf32>
    "tpu.trace_start"() <{level = 10 : i32, message = "bls,bse->ble"}> : () -> ()
    %cst_14 = arith.constant dense<0.000000e+00> : vector<2x8x4xf32>
    %50 = tpu.matmul %49, %34, %cst_14 {dimension_numbers = #tpu.dot_dimension_numbers<[2], [1], [1], [2], [0, 0, 0, 1, 1, 2], [0], [0]>} : vector<2x8x8xf32>, vector<2x8x4xf32>, vector<2x8x4xf32> -> vector<2x8x4xf32>
    "tpu.trace_stop"() : () -> ()
    %51 = vector.extract_strided_slice %8 {offsets = [0, 0, 8], sizes = [2, 8, 4], strides = [1, 1, 1]} : vector<2x8x16xf32> to vector<2x8x4xf32>
    %52 = vector.extract_strided_slice %10 {offsets = [0, 0, 8], sizes = [2, 8, 4], strides = [1, 1, 1]} : vector<2x8x16xf32> to vector<2x8x4xf32>
    %53 = vector.extract_strided_slice %12 {offsets = [0, 0, 8], sizes = [2, 8, 4], strides = [1, 1, 1]} : vector<2x8x16xf32> to vector<2x8x4xf32>
    "tpu.trace_start"() <{level = 10 : i32, message = "ble,bse->bls"}> : () -> ()
    %cst_15 = arith.constant dense<0.000000e+00> : vector<2x8x8xf32>
    %54 = tpu.matmul %51, %52, %cst_15 {dimension_numbers = #tpu.dot_dimension_numbers<[2], [2], [1], [1], [0, 0, 0, 1, 1, 1], [0], [0]>} : vector<2x8x4xf32>, vector<2x8x4xf32>, vector<2x8x8xf32> -> vector<2x8x8xf32>
    "tpu.trace_stop"() : () -> ()
    %cst_16 = arith.constant dense<0xFF800000> : vector<2x8xf32>
    %55 = vector.multi_reduction <maximumf>, %54, %cst_16 [2] : vector<2x8x8xf32> to vector<2x8xf32>
    %56 = vector.shape_cast %55 : vector<2x8xf32> to vector<2x8x1xf32>
    %57 = vector.broadcast %56 : vector<2x8x1xf32> to vector<2x8x8xf32>
    %58 = arith.subf %54, %57 : vector<2x8x8xf32>
    %59 = math.exp %58 : vector<2x8x8xf32>
    %cst_17 = arith.constant dense<0.000000e+00> : vector<2x8xf32>
    %60 = vector.multi_reduction <add>, %59, %cst_17 [2] : vector<2x8x8xf32> to vector<2x8xf32>
    %61 = vector.shape_cast %60 : vector<2x8xf32> to vector<2x8x1xf32>
    %62 = tpu.reciprocal %61 {approx = true} : vector<2x8x1xf32> -> vector<2x8x1xf32>
    %63 = arith.mulf %61, %62 : vector<2x8x1xf32>
    %cst_18 = arith.constant 2.000000e+00 : f32
    %64 = vector.broadcast %cst_18 : f32 to vector<2x8x1xf32>
    %65 = arith.subf %64, %63 : vector<2x8x1xf32>
    %66 = arith.mulf %62, %65 : vector<2x8x1xf32>
    %67 = vector.broadcast %66 : vector<2x8x1xf32> to vector<2x8x8xf32>
    %68 = arith.mulf %59, %67 : vector<2x8x8xf32>
    "tpu.trace_start"() <{level = 10 : i32, message = "bls,bse->ble"}> : () -> ()
    %cst_19 = arith.constant dense<0.000000e+00> : vector<2x8x4xf32>
    %69 = tpu.matmul %68, %53, %cst_19 {dimension_numbers = #tpu.dot_dimension_numbers<[2], [1], [1], [2], [0, 0, 0, 1, 1, 2], [0], [0]>} : vector<2x8x8xf32>, vector<2x8x4xf32>, vector<2x8x4xf32> -> vector<2x8x4xf32>
    "tpu.trace_stop"() : () -> ()
    %70 = vector.extract_strided_slice %8 {offsets = [0, 0, 12], sizes = [2, 8, 4], strides = [1, 1, 1]} : vector<2x8x16xf32> to vector<2x8x4xf32>
    %71 = vector.extract_strided_slice %10 {offsets = [0, 0, 12], sizes = [2, 8, 4], strides = [1, 1, 1]} : vector<2x8x16xf32> to vector<2x8x4xf32>
    %72 = vector.extract_strided_slice %12 {offsets = [0, 0, 12], sizes = [2, 8, 4], strides = [1, 1, 1]} : vector<2x8x16xf32> to vector<2x8x4xf32>
    "tpu.trace_start"() <{level = 10 : i32, message = "ble,bse->bls"}> : () -> ()
    %cst_20 = arith.constant dense<0.000000e+00> : vector<2x8x8xf32>
    %73 = tpu.matmul %70, %71, %cst_20 {dimension_numbers = #tpu.dot_dimension_numbers<[2], [2], [1], [1], [0, 0, 0, 1, 1, 1], [0], [0]>} : vector<2x8x4xf32>, vector<2x8x4xf32>, vector<2x8x8xf32> -> vector<2x8x8xf32>
    "tpu.trace_stop"() : () -> ()
    %cst_21 = arith.constant dense<0xFF800000> : vector<2x8xf32>
    %74 = vector.multi_reduction <maximumf>, %73, %cst_21 [2] : vector<2x8x8xf32> to vector<2x8xf32>
    %75 = vector.shape_cast %74 : vector<2x8xf32> to vector<2x8x1xf32>
    %76 = vector.broadcast %75 : vector<2x8x1xf32> to vector<2x8x8xf32>
    %77 = arith.subf %73, %76 : vector<2x8x8xf32>
    %78 = math.exp %77 : vector<2x8x8xf32>
    %cst_22 = arith.constant dense<0.000000e+00> : vector<2x8xf32>
    %79 = vector.multi_reduction <add>, %78, %cst_22 [2] : vector<2x8x8xf32> to vector<2x8xf32>
    %80 = vector.shape_cast %79 : vector<2x8xf32> to vector<2x8x1xf32>
    %81 = tpu.reciprocal %80 {approx = true} : vector<2x8x1xf32> -> vector<2x8x1xf32>
    %82 = arith.mulf %80, %81 : vector<2x8x1xf32>
    %cst_23 = arith.constant 2.000000e+00 : f32
    %83 = vector.broadcast %cst_23 : f32 to vector<2x8x1xf32>
    %84 = arith.subf %83, %82 : vector<2x8x1xf32>
    %85 = arith.mulf %81, %84 : vector<2x8x1xf32>
    %86 = vector.broadcast %85 : vector<2x8x1xf32> to vector<2x8x8xf32>
    %87 = arith.mulf %78, %86 : vector<2x8x8xf32>
    "tpu.trace_start"() <{level = 10 : i32, message = "bls,bse->ble"}> : () -> ()
    %cst_24 = arith.constant dense<0.000000e+00> : vector<2x8x4xf32>
    %88 = tpu.matmul %87, %72, %cst_24 {dimension_numbers = #tpu.dot_dimension_numbers<[2], [1], [1], [2], [0, 0, 0, 1, 1, 2], [0], [0]>} : vector<2x8x8xf32>, vector<2x8x4xf32>, vector<2x8x4xf32> -> vector<2x8x4xf32>
    "tpu.trace_stop"() : () -> ()
    %89 = tpu.concatenate %31, %50, %69, %88 in 2 : vector<2x8x4xf32>, vector<2x8x4xf32>, vector<2x8x4xf32>, vector<2x8x4xf32> -> vector<2x8x16xf32>
    %90 = vector.shape_cast %89 : vector<2x8x16xf32> to vector<16x16xf32>
    %c0_25 = arith.constant 0 : index
    %c0_26 = arith.constant 0 : index
    %91 = vector.load %arg4[%c0_25, %c0_26] : memref<16x16xf32, #tpu.memory_space<vmem>>, vector<16x16xf32>
    %cst_27 = arith.constant dense<0.000000e+00> : vector<16x16xf32>
    %92 = tpu.matmul %90, %91, %cst_27 {dimension_numbers = #tpu.dot_dimension_numbers<[1], [0], [0], [1], [0, 0, 1, 1], [], []>} : vector<16x16xf32>, vector<16x16xf32>, vector<16x16xf32> -> vector<16x16xf32>
    %c0_28 = arith.constant 0 : index
    %c0_29 = arith.constant 0 : index
    %93 = vector.load %arg5[%c0_28, %c0_29] : memref<1x16xf32, #tpu.memory_space<vmem>>, vector<1x16xf32>
    %94 = vector.broadcast %93 : vector<1x16xf32> to vector<16x16xf32>
    %95 = arith.addf %92, %94 : vector<16x16xf32>
    %96 = tpu.concatenate %95, %6 in 1 : vector<16x16xf32>, vector<16x16xf32> -> vector<16x32xf32>
    %c0_30 = arith.constant 0 : index
    %c0_31 = arith.constant 0 : index
    %97 = vector.load %arg6[%c0_30, %c0_31] : memref<16x32xf32, #tpu.memory_space<vmem>>, vector<16x32xf32>
    tpu.vector_store %arg6[%c0_30, %c0_31], %96 {strides = array<i32>} : memref<16x32xf32, #tpu.memory_space<vmem>>, vector<16x32xf32>,
    return
  }
  func.func @transform_0(%arg0: i32) -> (i32, i32) {
    %c0_i32 = arith.constant 0 : i32
    %c0_i32_0 = arith.constant 0 : i32
    return %arg0, %c0_i32 : i32, i32
  }
  func.func @transform_1(%arg0: i32) -> (i32, i32) {
    %c0_i32 = arith.constant 0 : i32
    %c0_i32_0 = arith.constant 0 : i32
    %c0_i32_1 = arith.constant 0 : i32
    return %c0_i32, %c0_i32_0 : i32, i32
  }
  func.func @transform_2(%arg0: i32) -> (i32, i32) {
    %c0_i32 = arith.constant 0 : i32
    %c0_i32_0 = arith.constant 0 : i32
    %c0_i32_1 = arith.constant 0 : i32
    return %c0_i32, %c0_i32_0 : i32, i32
  }
  func.func @transform_3(%arg0: i32) -> (i32, i32) {
    %c0_i32 = arith.constant 0 : i32
    %c0_i32_0 = arith.constant 0 : i32
    %c0_i32_1 = arith.constant 0 : i32
    return %c0_i32, %c0_i32_0 : i32, i32
  }
  func.func @transform_4(%arg0: i32) -> (i32, i32) {
    %c0_i32 = arith.constant 0 : i32
    %c0_i32_0 = arith.constant 0 : i32
    %c0_i32_1 = arith.constant 0 : i32
    return %c0_i32, %c0_i32_0 : i32, i32
  }
  func.func @transform_5(%arg0: i32) -> (i32, i32) {
    %c0_i32 = arith.constant 0 : i32
    %c0_i32_0 = arith.constant 0 : i32
    return %arg0, %c0_i32 : i32, i32
  }
}

</mosaic_0001>

<bundles_post_ra>
// kernel: tpu_custom_call.1
= control target key start
LH: loop header
LB: loop body
LE: loop exit
PB: predicated region body
PF: predicated region fallthrough
CT: control target
= control target key end

     0   :  { %10 = vsyncpa [#allocation3], 0  ;;  %s2279_s0 = inlined_call_operand.hbm [shape: f32[16,64], index: 0, kind: input, shape index: {}]   ;;  %s2280_s1 = inlined_call_operand.hbm [shape: f32[64,64], index: 1, kind: input, shape index: {}]   ;;  %s2281_s2 = inlined_call_operand.vmem [shape: f32[1,64], index: 2, kind: input, shape index: {}]   ;;  %s2282_s3 = inlined_call_operand.hbm [shape: f32[16,16], index: 3, kind: input, shape index: {}]   ;;  %s2283_s4 = inlined_call_operand.vmem [shape: f32[1,16], index: 4, kind: input, shape index: {}]   ;;  %s2284_s5 = inlined_call_operand.hbm [shape: f32[16,32], index: 5, kind: output, shape index: {}]  }
   0x1   :  { %11 = vsyncpa [#allocation6], 0 }
   0x2   :  { %12 = vsyncpa [#allocation4], 0  ;;  %s2011_s18 = smov [#allocation5]   ;;  %s2012_s20 = smov [#allocation2]  }
   0x3   :  { %s30_s19 = sshll.u32 %s2011_s18, 4  ;;  %s18_s21 = sshll.u32 %s2012_s20, 4  ;;  %s31_s19 = int_to_ptr.vmem [resolvable:$true] %s30_s19  ;;  %s2064_s21 = int_to_ptr.vmem [resolvable:$true] %s18_s21 }
   0x4   :  { %s1917_s24 = scalar_lea.hbm %s2280_s1, 1024 }
   0x5   :  { %p1918_p0 = scmp.ne.s32.totalorder %s2280_s1, %s1917_s24  ;;  %p1921_p1 = scmp.lt.u32.totalorder %s1917_s24, %s2280_s1 }
   0x7   :  { %p1923_p2 = pnand %p1921_p1, %p1918_p0 }
   0x9   :  { %1926 = shalt.err (!%p1923_p2)
}
   0xa   :  { %s1927_s29 = scalar_lea.vmem %s31_s19, 1024  ;;  %p1932_p4 = scmp.lt.s32.totalorder %s31_s19, %s31_s19 }
   0xb   :  { %p1928_p3 = scmp.ne.s32.totalorder %s31_s19, %s1927_s29  ;;  %p1933_p5 = scmp.lt.s32.totalorder %s1927_s29, %s1927_s29 }
   0xd   :  { %p1934_p6 = por %p1933_p5, %p1932_p4 }
   0xf   :  { %p1935_p7 = pnand %p1934_p6, %p1928_p3 }
  0x11   :  { %1938 = shalt.err (!%p1935_p7)
}
  0x12   :  { %s2013_s30 = smov 128   ;;  %s2014_s6 = smov 8  }
  0x13   :  { %36 = dma.hbm_to_vmem [thread:$0]  %s2280_s1, 1024, %s31_s19, [#allocation6], %s2013_s30, %s2013_s30, %s2014_s6  }
  0x14   :  { %s1939_s11 = scalar_lea.hbm %s2279_s0, 256 }
  0x15   :  { %p1940_p8 = scmp.ne.s32.totalorder %s2279_s0, %s1939_s11  ;;  %p1943_p9 = scmp.lt.u32.totalorder %s1939_s11, %s2279_s0 }
  0x17   :  { %p1945_p10 = pnand %p1943_p9, %p1940_p8 }
  0x19   :  { %1948 = shalt.err (!%p1945_p10)
}
  0x1a   :  { %s1949_s16 = scalar_lea.vmem %s2064_s21, 256  ;;  %p1954_p12 = scmp.lt.s32.totalorder %s2064_s21, %s2064_s21 }
  0x1b   :  { %p1950_p11 = scmp.ne.s32.totalorder %s2064_s21, %s1949_s16  ;;  %p1955_p13 = scmp.lt.s32.totalorder %s1949_s16, %s1949_s16 }
  0x1d   :  { %p1956_p0 = por %p1955_p13, %p1954_p12 }
  0x1f   :  { %p1957_p1 = pnand %p1956_p0, %p1950_p11 }
  0x21   :  { %1960 = shalt.err (!%p1957_p1)
}
  0x22   :  { %24 = dma.hbm_to_vmem [thread:$0]  %s2279_s0, 256, %s2064_s21, [#allocation3], %s2013_s30, %s2013_s30, %s2014_s6  }
  0x23   :  { %s2015_s18 = smov [#allocation7]   ;;  %s1961_s23 = scalar_lea.hbm %s2282_s3, 256 }
  0x24   :  { %s44_s19 = sshll.u32 %s2015_s18, 4  ;;  %p1962_p2 = scmp.ne.s32.totalorder %s2282_s3, %s1961_s23  ;;  %s45_s19 = int_to_ptr.vmem [resolvable:$true] %s44_s19 }
  0x25   :  { %p1965_p3 = scmp.lt.u32.totalorder %s1961_s23, %s2282_s3 }
  0x27   :  { %p1967_p4 = pnand %p1965_p3, %p1962_p2 }
  0x29   :  { %1970 = shalt.err (!%p1967_p4)
}
  0x2a   :  { %s1971_s28 = scalar_lea.vmem %s45_s19, 256  ;;  %p1976_p6 = scmp.lt.s32.totalorder %s45_s19, %s45_s19 }
  0x2b   :  { %p1972_p5 = scmp.ne.s32.totalorder %s45_s19, %s1971_s28  ;;  %p1977_p7 = scmp.lt.s32.totalorder %s1971_s28, %s1971_s28 }
  0x2d   :  { %p1978_p8 = por %p1977_p7, %p1976_p6 }
  0x2f   :  { %p1979_p9 = pnand %p1978_p8, %p1972_p5 }
  0x31   :  { %1982 = shalt.err (!%p1979_p9)
}
  0x32   :  { %50 = dma.hbm_to_vmem [thread:$0]  %s2282_s3, 256, %s45_s19, [#allocation6], %s2013_s30, %s2013_s30, %s2014_s6  }
  0x33   :  { %2005 = dma.done.wait [#allocation3], 256  }
  0x34   :  { %2006 = vsyncadd [#allocation3], 4294967040 }
  0x35   :  { %2007 = dma.done.wait [#allocation6], 1280  }
  0x36   :  { %2008 = vsyncadd [#allocation6], 4294966016  ;;  %v64_v0 = vld [vmem:[#allocation5] sm:$0xff]  ;;  %v65_v1 = vld [vmem:[#allocation5 + $0x8] sm:$0xff]  ;;  %vm79_vm0 = vcmask 523264   ;;  %v2016_v14 = vmov 0.0  }
  0x37   :  { %v66_v2 = vld [vmem:[#allocation5 + $0x10] sm:$0xff]  ;;  %v1842_v3 = vpack.c.bf16 %v65_v1, %v64_v0  ;;  %v67_v4 = vld [vmem:[#allocation5 + $0x18] sm:$0xff]  ;;  %v68_v6 = vld [vmem:[#allocation5 + $0x20] sm:$0xff]  ;;  %1755 = vmatprep.subr.mxu1 %v2016_v14  ;;  %vm2017_vm1 = vmmov 0   ;;  %s2018_s7 = smov 96   ;;  %s2019_s8 = smov 112  }
  0x38   :  { %v1846_v5 = vpack.c.bf16 %v67_v4, %v66_v2  ;;  %v69_v7 = vld [vmem:[#allocation5 + $0x28] sm:$0xff]  ;;  %v62_v8 = vld [vmem:[#allocation2] sm:$0xff]  ;;  %v71_v11 = vld [vmem:[#allocation5 + $0x38] sm:$0xff]  ;;  %1757 = vmatprep.mubr.msk.f32.mxu1 %vm2017_vm1, %v2016_v14  ;;  %vm166_vm2 = vcmask 31744   ;;  %vm320_vm3 = vcmask 64512   ;;  %s2021_s9 = smov 92  }
  0x39   :  { %1843 = vmatprep.subr.bf16.mxu0 %v1842_v3  ;;  %1752 = vmatprep.mubr.msk.f32.mxu0 %vm79_vm0, %v62_v8  ;;  %v1850_v9 = vpack.c.bf16 %v69_v7, %v68_v6  ;;  %v70_v10 = vld [vmem:[#allocation5 + $0x30] sm:$0xff]  ;;  %v63_v13 = vld [vmem:[#allocation2 + $0x8] sm:$0xff]  ;;  %s2022_s10 = smov 108   ;;  %s2023_s11 = smov 76   ;;  %vm1537_vm4 = vcmask 97280   ;;  %vm1549_vm5 = vcmask 130048  }
  0x3a   :  { %1845 = vmatpush3.bf16.msra.mxu0 %v1842_v3  ;;  %v1854_v12 = vpack.c.bf16 %v71_v11, %v70_v10  ;;  %v1660_v15 = vld [vmem:[%s2281_s2] ss:$0 sm:$0xff]  ;;  %s2020_s2 = smov 80   ;;  %s2024_s12 = smov 88   ;;  %vm1639_vm6 = vcmask 261120  }
  0x3b   :  { %1847 = vmatprep.subr.bf16.mxu0 %v1846_v5  ;;  %s2025_s13 = smov 104   ;;  %s2026_s14 = smov 72  }
  0x3c   :  { %s2027_s15 = smov 84   ;;  %s2028_s16 = smov 100  }
  0x3d   :  { %s2029_s1 = smov 68   ;;  %s2030_s17 = smov 4  }
  0x3e   :  { %1849 = vmatpush3.bf16.msra.mxu0 %v1846_v5  ;;  %s2031_s18 = smov 12   ;;  %s2032_s19 = smov 16  }
  0x3f   :  { %1851 = vmatprep.subr.bf16.mxu0 %v1850_v9  ;;  %s2033_s23 = smov [#allocation8]  }
  0x40   :  { %s1647_s24 = sshll.u32 %s2033_s23, 4  ;;  %s1648_s24 = int_to_ptr.vmem [resolvable:$true] %s1647_s24 }
  0x41   :  { %s1983_s25 = scalar_lea.vmem %s1648_s24, 256  ;;  %p1988_p11 = scmp.lt.s32.totalorder %s1648_s24, %s1648_s24 }
  0x42   :  { %1853 = vmatpush3.bf16.msra.mxu0 %v1850_v9  ;;  %p1984_p10 = scmp.ne.s32.totalorder %s1648_s24, %s1983_s25  ;;  %p1989_p12 = scmp.lt.s32.totalorder %s1983_s25, %s1983_s25 }
  0x43   :  { %1855 = vmatprep.subr.bf16.mxu0 %v1854_v12 }
  0x44   :  { %p1990_p13 = por %p1989_p12, %p1988_p11 }
  0x46   :  { %1857 = vmatpush3.bf16.msra.mxu0 %v1854_v12  ;;  %p1991_p0 = pnand %p1990_p13, %p1984_p10 }
  0x47   :  { %1775 = vmatprep.subr.mxu0 %v2016_v14 }
  0x49   :  { %1753 = vmatmul.mubr.msk.f32.vlgmr.msra.gmra.mrb[0].mxu0 %vm79_vm0, %v63_v13 }
  0x4a   :  { %1777 = vmatprep.mubr.msk.f32.mxu0 %vm2017_vm1, %v2016_v14 }
 0x11c   :  { %v1754_v16 = vpop.f32.mrb[0].mxu0 }
 0x11d   :  { %v2127_v17 = vadd.f32 %v1754_v16, %v1660_v15  ;;  %v152_v18 = vpop.f32.mrb[1].mxu0 }
 0x11e   :  { %v2129_v19 = vadd.f32 %v1660_v15, %v152_v18 }
 0x11f   :  { %244 = vrot.lane.b32.xlu1 %v2127_v17, %s2018_s7 }
 0x120   :  { %164 = vrot.lane.b32.xlu0 %v2129_v19, %s2018_s7 }
 0x123   :  { %242 = vrot.lane.b32.xlu1 %v2127_v17, %s2019_s8 }
 0x124   :  { %162 = vrot.lane.b32.xlu0 %v2129_v19, %s2019_s8 }
 0x191   :  { %v245_v21 = vpop.permute.xlu1 %244 }
 0x192   :  { %v165_v20 = vpop.permute.xlu0 %164 }
 0x193   :  { %1756 = vmatpush3.xpose.msk.msra.mxu1 %vm166_vm2, %v165_v20 }
 0x194   :  { %1760 = vmatprep.subr.mxu1 %v2016_v14 }
 0x195   :  { %v243_v23 = vpop.permute.xlu1 %242 }
 0x196   :  { %v163_v22 = vpop.permute.xlu0 %162 }
 0x197   :  { %1758 = vmatmul.mubr.msk.f32.vlgmr.msra.gmra.mrb[0].mxu1 %vm166_vm2, %v163_v22 }
 0x198   :  { %1761 = vmatpush3.xpose.msk.msra.mxu1 %vm166_vm2, %v245_v21  ;;  %1762 = vmatprep.mubr.msk.f32.mxu1 %vm2017_vm1, %v2016_v14 }
 0x199   :  { %1765 = vmatprep.subr.mxu1 %v2016_v14 }
 0x19b   :  { %1763 = vmatmul.mubr.msk.f32.vlgmr.msra.gmra.mrb[2].mxu1 %vm166_vm2, %v243_v23 }
 0x19c   :  { %1767 = vmatprep.mubr.msk.f32.mxu1 %vm2017_vm1, %v2016_v14 }
 0x26a   :  { %v237_v24 = vpop.f32.mrb[0].mxu1 }
 0x26b   :  { %v1759_v25 = vpop.f32.mrb[1].mxu1  ;;  %v321_v26 = vsel %vm320_vm3, %v237_v24, -inf }
 0x26c   :  { %322 = vmax.xlane.f32.xlu0 %v321_v26 }
 0x26e   :  { %v316_v27 = vpop.f32.mrb[2].mxu1 }
 0x26f   :  { %v1764_v28 = vpop.f32.mrb[3].mxu1  ;;  %v324_v29 = vsel %vm320_vm3, %v316_v27, -inf }
 0x270   :  { %325 = vmax.xlane.f32.xlu1 %v324_v29 }
 0x281   :  { %349 = vrot.lane.b32.xlu1 %v2129_v19, %s2020_s2 }
 0x285   :  { %503 = vrot.lane.b32.xlu1 %v2129_v19, %s2021_s9 }
 0x289   :  { %581 = vrot.lane.b32.xlu1 %v2127_v17, %s2021_s9 }
 0x28d   :  { %579 = vrot.lane.b32.xlu1 %v2127_v17, %s2022_s10 }
 0x2f9   :  { %v323_v30 = vpop.xlane.xlu0 %322 }
 0x2fa   :  { %v327_v31 = vsub.f32 %v237_v24, %v323_v30 }
 0x2fc   :  { %v329_v32 = vmul.f32 1.442695, %v327_v31 }
 0x2fd   :  { %v326_v33 = vpop.xlane.xlu1 %325 }
 0x2fe   :  { %1885 = vpow2.f32 %v329_v32  ;;  %v328_v34 = vsub.f32 %v316_v27, %v326_v33 }
 0x300   :  { %v331_v35 = vmul.f32 1.442695, %v328_v34 }
 0x301   :  { %v350_v36 = vpop.permute.xlu1 %349 }
 0x302   :  { %1887 = vpow2.f32 %v331_v35  ;;  %1766 = vmatpush3.msra.mxu1 %v350_v36 }
 0x303   :  { %1770 = vmatprep.subr.mxu1 %v2016_v14 }
 0x305   :  { %v504_v37 = vpop.permute.xlu1 %503 }
 0x306   :  { %1776 = vmatpush3.xpose.msk.msra.mxu0 %vm166_vm2, %v504_v37 }
 0x307   :  { %1785 = vmatprep.subr.mxu0 %v2016_v14 }
 0x308   :  { %v1886_v38 = vpop.eup %1885 }
 0x309   :  { %v333_v39 = vsel %vm320_vm3, %v1886_v38, 0.0  ;;  %v582_v56 = vpop.permute.xlu1 %581 }
 0x30a   :  { %334 = vadd.xlane.f32.xlu0 %v333_v39 }
 0x30c   :  { %v1888_v40 = vpop.eup %1887 }
 0x30d   :  { %v336_v41 = vsel %vm320_vm3, %v1888_v40, 0.0  ;;  %v580_v57 = vpop.permute.xlu1 %579 }
 0x30e   :  { %337 = vadd.xlane.f32.xlu0 %v336_v41 }
 0x324   :  { %425 = vrot.lane.b32.xlu0 %v2127_v17, %s2020_s2 }
 0x328   :  { %501 = vrot.lane.b32.xlu0 %v2129_v19, %s2022_s10 }
 0x397   :  { %v335_v42 = vpop.xlane.xlu0 %334 }
 0x398   :  { %1889 = vrcp.f32 %v335_v42 }
 0x39b   :  { %v338_v43 = vpop.xlane.xlu0 %337 }
 0x39c   :  { %1891 = vrcp.f32 %v338_v43 }
 0x39f   :  { %v426_v44 = vpop.permute.xlu0 %425 }
 0x3a2   :  { %v1890_v45 = vpop.eup %1889 }
 0x3a3   :  { %v341_v46 = vmul.f32 %v1890_v45, %v335_v42  ;;  %v502_v47 = vpop.permute.xlu0 %501 }
 0x3a4   :  { %1778 = vmatmul.mubr.msk.f32.vlgmr.msra.gmra.mrb[2].mxu0 %vm166_vm2, %v502_v47 }
 0x3a5   :  { %v343_v48 = vsub.f32 2.0, %v341_v46  ;;  %1787 = vmatprep.mubr.msk.f32.mxu0 %vm2017_vm1, %v2016_v14 }
 0x3a6   :  { %v1892_v49 = vpop.eup %1891 }
 0x3a7   :  { %v345_v50 = vmul.f32 %v1890_v45, %v343_v48  ;;  %v342_v51 = vmul.f32 %v1892_v49, %v338_v43 }
 0x3a9   :  { %v347_v52 = vmul.f32 %v1886_v38, %v345_v50  ;;  %v344_v53 = vsub.f32 2.0, %v342_v51 }
 0x3ab   :  { %v346_v54 = vmul.f32 %v1892_v49, %v344_v53  ;;  %1768 = vmatmul.mubr.msk.f32.vlgmr.msra.gmra.mrb[4].mxu1 %vm320_vm3, %v347_v52 }
 0x3ac   :  { %1771 = vmatpush3.msra.mxu1 %v426_v44  ;;  %1772 = vmatprep.mubr.msk.f32.mxu1 %vm2017_vm1, %v2016_v14 }
 0x3ad   :  { %v348_v55 = vmul.f32 %v1888_v40, %v346_v54  ;;  %1780 = vmatprep.subr.mxu1 %v2016_v14 }
 0x3af   :  { %1773 = vmatmul.mubr.msk.f32.vlgmr.msra.gmra.mrb[6].mxu1 %vm320_vm3, %v348_v55 }
 0x3b0   :  { %1782 = vmatprep.mubr.msk.f32.mxu1 %vm2017_vm1, %v2016_v14 }
 0x3b3   :  { %1781 = vmatpush3.xpose.msk.msra.mxu1 %vm166_vm2, %v582_v56 }
 0x3b4   :  { %1790 = vmatprep.subr.mxu1 %v2016_v14 }
 0x3b6   :  { %1783 = vmatmul.mubr.msk.f32.vlgmr.msra.gmra.mrb[8].mxu1 %vm166_vm2, %v580_v57 }
 0x3b7   :  { %1792 = vmatprep.mubr.msk.f32.mxu1 %vm2017_vm1, %v2016_v14 }
 0x477   :  { %v575_v58 = vpop.f32.mrb[2].mxu0 }
 0x478   :  { %v1779_v59 = vpop.f32.mrb[3].mxu0  ;;  %v657_v60 = vsel %vm320_vm3, %v575_v58, -inf }
 0x479   :  { %658 = vmax.xlane.f32.xlu0 %v657_v60 }
 0x47e   :  { %v2174_v61 = vpop.f32.mrb[4].mxu1 }
 0x47f   :  { %v1769_v62 = vpop.f32.mrb[5].mxu1 }
 0x482   :  { %v2176_v63 = vpop.f32.mrb[6].mxu1 }
 0x483   :  { %v1774_v0 = vpop.f32.mrb[7].mxu1 }
 0x489   :  { %v653_v1 = vpop.f32.mrb[8].mxu1 }
 0x48a   :  { %v1784_v2 = vpop.f32.mrb[9].mxu1  ;;  %v660_v3 = vsel %vm320_vm3, %v653_v1, -inf }
 0x48b   :  { %661 = vmax.xlane.f32.xlu1 %v660_v3 }
 0x49c   :  { %685 = vrot.lane.b32.xlu1 %v2129_v19, %s2023_s11 }
 0x4a0   :  { %839 = vrot.lane.b32.xlu1 %v2129_v19, %s2024_s12 }
 0x4a4   :  { %917 = vrot.lane.b32.xlu1 %v2127_v17, %s2024_s12 }
 0x4a8   :  { %915 = vrot.lane.b32.xlu1 %v2127_v17, %s2025_s13 }
 0x506   :  { %v659_v4 = vpop.xlane.xlu0 %658 }
 0x507   :  { %v663_v5 = vsub.f32 %v575_v58, %v659_v4 }
 0x509   :  { %v665_v6 = vmul.f32 1.442695, %v663_v5 }
 0x50b   :  { %1893 = vpow2.f32 %v665_v6 }
 0x515   :  { %v1894_v7 = vpop.eup %1893 }
 0x516   :  { %v669_v8 = vsel %vm320_vm3, %v1894_v7, 0.0 }
 0x517   :  { %670 = vadd.xlane.f32.xlu0 %v669_v8 }
 0x518   :  { %v662_v9 = vpop.xlane.xlu1 %661 }
 0x519   :  { %v664_v10 = vsub.f32 %v653_v1, %v662_v9 }
 0x51b   :  { %v667_v11 = vmul.f32 1.442695, %v664_v10 }
 0x51c   :  { %v686_v12 = vpop.permute.xlu1 %685 }
 0x51d   :  { %1895 = vpow2.f32 %v667_v11  ;;  %1786 = vmatpush3.msra.mxu0 %v686_v12 }
 0x51e   :  { %1795 = vmatprep.subr.mxu0 %v2016_v14 }
 0x520   :  { %v840_v25 = vpop.permute.xlu1 %839 }
 0x524   :  { %v918_v32 = vpop.permute.xlu1 %917 }
 0x527   :  { %v1896_v13 = vpop.eup %1895 }
 0x528   :  { %v672_v15 = vsel %vm320_vm3, %v1896_v13, 0.0  ;;  %v916_v34 = vpop.permute.xlu1 %915 }
 0x529   :  { %673 = vadd.xlane.f32.xlu0 %v672_v15 }
 0x53f   :  { %761 = vrot.lane.b32.xlu0 %v2127_v17, %s2023_s11 }
 0x543   :  { %837 = vrot.lane.b32.xlu0 %v2129_v19, %s2025_s13 }
 0x5a4   :  { %v671_v16 = vpop.xlane.xlu0 %670 }
 0x5a5   :  { %1897 = vrcp.f32 %v671_v16 }
 0x5af   :  { %v1898_v18 = vpop.eup %1897 }
 0x5b0   :  { %v677_v20 = vmul.f32 %v1898_v18, %v671_v16 }
 0x5b2   :  { %v679_v21 = vsub.f32 2.0, %v677_v20 }
 0x5b4   :  { %v681_v22 = vmul.f32 %v1898_v18, %v679_v21 }
 0x5b6   :  { %v683_v23 = vmul.f32 %v1894_v7, %v681_v22  ;;  %v674_v24 = vpop.xlane.xlu0 %673 }
 0x5b7   :  { %1899 = vrcp.f32 %v674_v24 }
 0x5b8   :  { %1788 = vmatmul.mubr.msk.f32.vlgmr.msra.gmra.mrb[4].mxu0 %vm320_vm3, %v683_v23 }
 0x5b9   :  { %1796 = vmatpush3.xpose.msk.msra.mxu0 %vm166_vm2, %v840_v25  ;;  %1797 = vmatprep.mubr.msk.f32.mxu0 %vm2017_vm1, %v2016_v14 }
 0x5ba   :  { %v762_v26 = vpop.permute.xlu0 %761  ;;  %1805 = vmatprep.subr.mxu0 %v2016_v14 }
 0x5bb   :  { %1791 = vmatpush3.msra.mxu1 %v762_v26 }
 0x5bc   :  { %1800 = vmatprep.subr.mxu1 %v2016_v14 }
 0x5be   :  { %v838_v27 = vpop.permute.xlu0 %837 }
 0x5bf   :  { %1798 = vmatmul.mubr.msk.f32.vlgmr.msra.gmra.mrb[6].mxu0 %vm166_vm2, %v838_v27 }
 0x5c0   :  { %1807 = vmatprep.mubr.msk.f32.mxu0 %vm2017_vm1, %v2016_v14 }
 0x5c1   :  { %v1900_v28 = vpop.eup %1899 }
 0x5c2   :  { %v678_v29 = vmul.f32 %v1900_v28, %v674_v24 }
 0x5c4   :  { %v680_v30 = vsub.f32 2.0, %v678_v29 }
 0x5c6   :  { %v682_v31 = vmul.f32 %v1900_v28, %v680_v30 }
 0x5c8   :  { %v684_v33 = vmul.f32 %v1896_v13, %v682_v31 }
 0x5ca   :  { %1793 = vmatmul.mubr.msk.f32.vlgmr.msra.gmra.mrb[10].mxu1 %vm320_vm3, %v684_v33 }
 0x5cb   :  { %1801 = vmatpush3.xpose.msk.msra.mxu1 %vm166_vm2, %v918_v32  ;;  %1802 = vmatprep.mubr.msk.f32.mxu1 %vm2017_vm1, %v2016_v14 }
 0x5cc   :  { %1810 = vmatprep.subr.mxu1 %v2016_v14 }
 0x5ce   :  { %1803 = vmatmul.mubr.msk.f32.vlgmr.msra.gmra.mrb[12].mxu1 %vm166_vm2, %v916_v34 }
 0x5cf   :  { %1812 = vmatprep.mubr.msk.f32.mxu1 %vm2017_vm1, %v2016_v14 }
 0x68b   :  { %v2205_v35 = vpop.f32.mrb[4].mxu0 }
 0x68c   :  { %v1789_v36 = vpop.f32.mrb[5].mxu0 }
 0x692   :  { %v911_v37 = vpop.f32.mrb[6].mxu0 }
 0x693   :  { %v1799_v38 = vpop.f32.mrb[7].mxu0  ;;  %v993_v39 = vsel %vm320_vm3, %v911_v37, -inf }
 0x694   :  { %994 = vmax.xlane.f32.xlu0 %v993_v39 }
 0x69d   :  { %v2208_v40 = vpop.f32.mrb[10].mxu1 }
 0x69e   :  { %v1794_v41 = vpop.f32.mrb[11].mxu1 }
 0x6a1   :  { %v989_v42 = vpop.f32.mrb[12].mxu1 }
 0x6a2   :  { %v1804_v43 = vpop.f32.mrb[13].mxu1  ;;  %v996_v44 = vsel %vm320_vm3, %v989_v42, -inf }
 0x6a3   :  { %997 = vmax.xlane.f32.xlu1 %v996_v44 }
 0x6b4   :  { %1021 = vrot.lane.b32.xlu1 %v2129_v19, %s2026_s14 }
 0x6b8   :  { %1175 = vrot.lane.b32.xlu1 %v2129_v19, %s2027_s15 }
 0x6bc   :  { %1253 = vrot.lane.b32.xlu1 %v2127_v17, %s2027_s15 }
 0x6c0   :  { %1251 = vrot.lane.b32.xlu1 %v2127_v17, %s2028_s16 }
 0x721   :  { %v995_v45 = vpop.xlane.xlu0 %994 }
 0x722   :  { %v999_v46 = vsub.f32 %v911_v37, %v995_v45 }
 0x724   :  { %v1001_v47 = vmul.f32 1.442695, %v999_v46 }
 0x726   :  { %1901 = vpow2.f32 %v1001_v47  ;;  %v1540_v47 = vld [vmem:[#allocation7] sm:$0xff] }
 0x730   :  { %v1902_v48 = vpop.eup %1901  ;;  %v998_v49 = vpop.xlane.xlu1 %997 }
 0x731   :  { %v1000_v50 = vsub.f32 %v989_v42, %v998_v49  ;;  %v1005_v51 = vsel %vm320_vm3, %v1902_v48, 0.0 }
 0x732   :  { %1006 = vadd.xlane.f32.xlu0 %v1005_v51 }
 0x733   :  { %v1003_v52 = vmul.f32 1.442695, %v1000_v50 }
 0x734   :  { %v1022_v53 = vpop.permute.xlu1 %1021 }
 0x735   :  { %1903 = vpow2.f32 %v1003_v52  ;;  %1806 = vmatpush3.msra.mxu0 %v1022_v53 }
 0x736   :  { %1815 = vmatprep.subr.mxu0 %v2016_v14 }
 0x738   :  { %v1176_v2 = vpop.permute.xlu1 %1175 }
 0x73c   :  { %v1254_v8 = vpop.permute.xlu1 %1253 }
 0x73f   :  { %v1904_v54 = vpop.eup %1903 }
 0x740   :  { %v1008_v55 = vsel %vm320_vm3, %v1904_v54, 0.0  ;;  %v1252_v10 = vpop.permute.xlu1 %1251 }
 0x741   :  { %1009 = vadd.xlane.f32.xlu0 %v1008_v55 }
 0x757   :  { %1097 = vrot.lane.b32.xlu0 %v2127_v17, %s2026_s14 }
 0x75b   :  { %1173 = vrot.lane.b32.xlu0 %v2129_v19, %s2028_s16 }
 0x7bf   :  { %v1007_v56 = vpop.xlane.xlu0 %1006 }
 0x7c0   :  { %1905 = vrcp.f32 %v1007_v56 }
 0x7ca   :  { %v1906_v57 = vpop.eup %1905 }
 0x7cb   :  { %v1013_v58 = vmul.f32 %v1906_v57, %v1007_v56 }
 0x7cd   :  { %v1015_v59 = vsub.f32 2.0, %v1013_v58 }
 0x7ce   :  { %v1010_v60 = vpop.xlane.xlu0 %1009 }
 0x7cf   :  { %v1017_v62 = vmul.f32 %v1906_v57, %v1015_v59  ;;  %1907 = vrcp.f32 %v1010_v60 }
 0x7d1   :  { %v1019_v0 = vmul.f32 %v1902_v48, %v1017_v62  ;;  %v1541_v48 = vld [vmem:[#allocation7 + $0x8] sm:$0xff] }
 0x7d2   :  { %v1098_v1 = vpop.permute.xlu0 %1097  ;;  %v1858_v49 = vpack.c.bf16 %v1541_v48, %v1540_v47 }
 0x7d3   :  { %1808 = vmatmul.mubr.msk.f32.vlgmr.msra.gmra.mrb[8].mxu0 %vm320_vm3, %v1019_v0  ;;  %1811 = vmatpush3.msra.mxu1 %v1098_v1 }
 0x7d4   :  { %1816 = vmatpush3.xpose.msk.msra.mxu0 %vm166_vm2, %v1176_v2  ;;  %1817 = vmatprep.mubr.msk.f32.mxu0 %vm2017_vm1, %v2016_v14 }
 0x7d5   :  { %1820 = vmatprep.subr.mxu1 %v2016_v14  ;;  %1825 = vmatprep.subr.mxu0 %v2016_v14 }
 0x7d6   :  { %v1174_v3 = vpop.permute.xlu0 %1173 }
 0x7d7   :  { %1818 = vmatmul.mubr.msk.f32.vlgmr.msra.gmra.mrb[10].mxu0 %vm166_vm2, %v1174_v3 }
 0x7d8   :  { %1827 = vmatprep.mubr.msk.f32.mxu0 %vm2017_vm1, %v2016_v14 }
 0x7d9   :  { %v1908_v4 = vpop.eup %1907 }
 0x7da   :  { %v1014_v5 = vmul.f32 %v1908_v4, %v1010_v60 }
 0x7dc   :  { %v1016_v6 = vsub.f32 2.0, %v1014_v5 }
 0x7de   :  { %v1018_v7 = vmul.f32 %v1908_v4, %v1016_v6 }
 0x7e0   :  { %v1020_v9 = vmul.f32 %v1904_v54, %v1018_v7 }
 0x7e2   :  { %1813 = vmatmul.mubr.msk.f32.vlgmr.msra.gmra.mrb[14].mxu1 %vm320_vm3, %v1020_v9 }
 0x7e3   :  { %1821 = vmatpush3.xpose.msk.msra.mxu1 %vm166_vm2, %v1254_v8  ;;  %1822 = vmatprep.mubr.msk.f32.mxu1 %vm2017_vm1, %v2016_v14 }
 0x7e4   :  { %1830 = vmatprep.subr.mxu1 %v2016_v14 }
 0x7e6   :  { %1823 = vmatmul.mubr.msk.f32.vlgmr.msra.gmra.mrb[16].mxu1 %vm166_vm2, %v1252_v10 }
 0x7e7   :  { %1832 = vmatprep.mubr.msk.f32.mxu1 %vm2017_vm1, %v2016_v14 }
 0x8a6   :  { %v1093_v11 = vpop.f32.mrb[8].mxu0 }
 0x8a7   :  { %v1809_v12 = vpop.f32.mrb[9].mxu0 }
 0x8aa   :  { %v1247_v13 = vpop.f32.mrb[10].mxu0 }
 0x8ab   :  { %v1819_v15 = vpop.f32.mrb[11].mxu0  ;;  %v1329_v16 = vsel %vm320_vm3, %v1247_v13, -inf }
 0x8ac   :  { %1330 = vmax.xlane.f32.xlu0 %v1329_v16 }
 0x8b5   :  { %v1169_v18 = vpop.f32.mrb[14].mxu1 }
 0x8b6   :  { %v1814_v20 = vpop.f32.mrb[15].mxu1 }
 0x8b9   :  { %v1325_v21 = vpop.f32.mrb[16].mxu1 }
 0x8ba   :  { %v1824_v22 = vpop.f32.mrb[17].mxu1  ;;  %v1332_v23 = vsel %vm320_vm3, %v1325_v21, -inf }
 0x8bb   :  { %1333 = vmax.xlane.f32.xlu1 %v1332_v23 }
 0x8cc   :  { %1357 = vrot.lane.b32.xlu1 %v2129_v19, %s2029_s1 }
 0x8d0   :  { %1511 = vrot.lane.b32.xlu1 %v2205_v35, %s2030_s17 }
 0x8d4   :  { %1513 = vrot.lane.b32.xlu1 %v2208_v40, %s2030_s17 }
 0x8d8   :  { %1521 = vrot.lane.b32.xlu1 %v1169_v18, %s2014_s6 }
 0x939   :  { %v1331_v14 = vpop.xlane.xlu0 %1330 }
 0x93a   :  { %v1335_v24 = vsub.f32 %v1247_v13, %v1331_v14 }
 0x93c   :  { %v1337_v25 = vmul.f32 1.442695, %v1335_v24 }
 0x93e   :  { %1909 = vpow2.f32 %v1337_v25 }
 0x948   :  { %v1910_v26 = vpop.eup %1909  ;;  %v1334_v27 = vpop.xlane.xlu1 %1333 }
 0x949   :  { %v1336_v28 = vsub.f32 %v1325_v21, %v1334_v27  ;;  %v1341_v29 = vsel %vm320_vm3, %v1910_v26, 0.0 }
 0x94a   :  { %1342 = vadd.xlane.f32.xlu0 %v1341_v29 }
 0x94b   :  { %v1339_v30 = vmul.f32 1.442695, %v1336_v28 }
 0x94c   :  { %v1358_v31 = vpop.permute.xlu1 %1357 }
 0x94d   :  { %1911 = vpow2.f32 %v1339_v30  ;;  %1826 = vmatpush3.msra.mxu0 %v1358_v31 }
 0x94e   :  { %1859 = vmatprep.subr.bf16.mxu0 %v1858_v49 }
 0x950   :  { %v1512_v54 = vpop.permute.xlu1 %1511 }
 0x951   :  { %v1533_v56 = vsel %vm166_vm2, %v2174_v61, %v1512_v54  ;;  %v1687_v61 = vld [vmem:[%s2283_s4] ss:$0 sm:$0xff] }
 0x954   :  { %v1514_v60 = vpop.permute.xlu1 %1513 }
 0x955   :  { %v1534_v62 = vsel %vm166_vm2, %v2176_v63, %v1514_v60 }
 0x957   :  { %v1912_v32 = vpop.eup %1911 }
 0x958   :  { %v1344_v33 = vsel %vm320_vm3, %v1912_v32, 0.0 }
 0x959   :  { %1345 = vadd.xlane.f32.xlu0 %v1344_v33 }
 0x96f   :  { %1433 = vrot.lane.b32.xlu0 %v2127_v17, %s2029_s1 }
 0x973   :  { %1519 = vrot.lane.b32.xlu0 %v1093_v11, %s2014_s6 }
 0x9d7   :  { %v1343_v34 = vpop.xlane.xlu0 %1342 }
 0x9d8   :  { %1913 = vrcp.f32 %v1343_v34 }
 0x9e2   :  { %v1914_v35 = vpop.eup %1913 }
 0x9e3   :  { %v1349_v36 = vmul.f32 %v1914_v35, %v1343_v34 }
 0x9e5   :  { %v1351_v37 = vsub.f32 2.0, %v1349_v36 }
 0x9e6   :  { %v1346_v38 = vpop.xlane.xlu0 %1345 }
 0x9e7   :  { %v1353_v39 = vmul.f32 %v1914_v35, %v1351_v37  ;;  %1915 = vrcp.f32 %v1346_v38 }
 0x9e9   :  { %v1355_v40 = vmul.f32 %v1910_v26, %v1353_v39 }
 0x9ea   :  { %v1434_v41 = vpop.permute.xlu0 %1433 }
 0x9eb   :  { %1828 = vmatmul.mubr.msk.f32.vlgmr.msra.gmra.mrb[12].mxu0 %vm320_vm3, %v1355_v40  ;;  %1831 = vmatpush3.msra.mxu1 %v1434_v41 }
 0x9ec   :  { %1861 = vmatpush3.bf16.msra.mxu0 %v1858_v49 }
 0x9ee   :  { %v1520_v55 = vpop.permute.xlu0 %1519 }
 0x9ef   :  { %v1535_v57 = vsel %vm320_vm3, %v1533_v56, %v1520_v55 }
 0x9f1   :  { %v1916_v42 = vpop.eup %1915 }
 0x9f2   :  { %v1350_v43 = vmul.f32 %v1916_v42, %v1346_v38 }
 0x9f4   :  { %v1352_v44 = vsub.f32 2.0, %v1350_v43 }
 0x9f6   :  { %v1354_v45 = vmul.f32 %v1916_v42, %v1352_v44 }
 0x9f8   :  { %v1356_v46 = vmul.f32 %v1912_v32, %v1354_v45 }
 0x9fa   :  { %1833 = vmatmul.mubr.msk.f32.vlgmr.msra.gmra.mrb[18].mxu1 %vm320_vm3, %v1356_v46 }
 0xabe   :  { %v1429_v50 = vpop.f32.mrb[12].mxu0 }
 0xabf   :  { %1527 = vrot.lane.b32.xlu0 %v1429_v50, %s2031_s18  ;;  %v1829_v51 = vpop.f32.mrb[13].mxu0 }
 0xac3   :  { %1631 = vrot.lane.b32.xlu0 %v2129_v19, %s2032_s19  ;;  %v1522_v19 = vpop.permute.xlu1 %1521 }
 0xacd   :  { %v1505_v52 = vpop.f32.mrb[18].mxu1 }
 0xace   :  { %1529 = vrot.lane.b32.xlu1 %v1505_v52, %s2031_s18  ;;  %v1834_v53 = vpop.f32.mrb[19].mxu1 }
 0xad2   :  { %1633 = vrot.lane.b32.xlu1 %v2127_v17, %s2032_s19  ;;  %v1536_v17 = vsel %vm320_vm3, %v1534_v62, %v1522_v19 }
 0xb31   :  { %v1528_v58 = vpop.permute.xlu0 %1527 }
 0xb32   :  { %v1538_v59 = vsel %vm1537_vm4, %v1535_v57, %v1528_v58 }
 0xb33   :  { %1839 = vmatprep.mubr.msk.f32.mxu0 %vm1549_vm5, %v1538_v59 }
 0xb35   :  { %v1632_v7 = vpop.permute.xlu0 %1631 }
 0xb40   :  { %v1530_v0 = vpop.permute.xlu1 %1529 }
 0xb41   :  { %v1539_v1 = vsel %vm1537_vm4, %v1536_v17, %v1530_v0 }
 0xb42   :  { %1840 = vmatmul.mubr.msk.f32.vlgmr.msra.gmra.mrb[14].mxu0 %vm1549_vm5, %v1539_v1 }
 0xb44   :  { %v1634_v5 = vpop.permute.xlu1 %1633 }
 0xc15   :  { %v1841_v2 = vpop.f32.mrb[14].mxu0 }
 0xc16   :  { %v1628_v3 = vadd.f32 %v1841_v2, %v1687_v61  ;;  %v1622_v4 = vpop.f32.mrb[15].mxu0 }
 0xc17   :  { %v1623_v6 = vadd.f32 %v1687_v61, %v1622_v4 }
 0xc18   :  { %v1638_v63 = vsel %vm1549_vm5, %v1628_v3, %v1634_v5 }
 0xc19   :  { %v1637_v8 = vsel %vm1549_vm5, %v1623_v6, %v1632_v7  ;;  %1641 = vst.msk [vmem:[#allocation8 + $0x8] sm:$0xff] %vm1639_vm6, %v1638_v63 }
 0xc1a   :  { %1640 = vst.msk [vmem:[#allocation8] sm:$0xff] %vm1639_vm6, %v1637_v8 }
 0xc1b   :  { %1994 = shalt.err (!%p1991_p0)
}
 0xc1c   :  { %s1995_s27 = scalar_lea.hbm %s2284_s5, 256 }
 0xc1d   :  { %p1996_p1 = scmp.ne.s32.totalorder %s2284_s5, %s1995_s27  ;;  %p1999_p2 = scmp.lt.u32.totalorder %s1995_s27, %s2284_s5 }
 0xc1f   :  { %p2001_p3 = pnand %p1999_p2, %p1996_p1 }
 0xc21   :  { %2004 = shalt.err (!%p2001_p3)
}
 0xc22   :  { %1653 = dma.vmem_to_hbm [thread:$0]  %s1648_s24, 256, %s2284_s5, [#allocation4], %s2013_s30, %s2013_s30, %s2014_s6  }
 0xc23   :  { %2009 = dma.done.wait [#allocation4], 256  }
 0xc24   :  { %2010 = vsyncadd [#allocation4], 4294967040 }
 0xc25   :  { %1657 = vsyncpa [#allocation3], 1 }
 0xc26   :  { %1658 = vsyncpa [#allocation6], 1 }
 0xc27   :  { %1659 = vsyncpa [#allocation4], 1 }

</bundles_post_ra>
